<compile_context>
chip_gen: v6e
topology: v6e:2x2x1
jax: 0.10.0
libtpu: 0.0.40
codegen_flags: <defaults>
</compile_context>

<pallas_src>
import numpy as np
import jax
import jax.numpy as jnp
from jax.experimental import pallas as pl
from jax.experimental.pallas import tpu as pltpu

EPS = 1e-5
SLOPE = 0.2


def dcgan_upconv_kernel(patch_ref, w_ref, gamma_ref, beta_ref, out_ref):
    # patch_ref : (4, 4*Cin, M)  per-phase im2col; lane dim M = N*H*W (lane-dense)
    # w_ref     : (4, Cout, 4*Cin)  phase-decomposed, tap-fused weights
    # gamma_ref : (Cout, 1)   BatchNorm weight
    # beta_ref  : (Cout, 1)   BatchNorm bias
    # out_ref   : (4, Cout, M)  row layout: [phase][channel][n*H*W + h*W + w]
    Cout = out_ref.shape[1]
    M = out_ref.shape[2]
    count = jnp.float32(4 * M)  # N * (2H) * (2W) output positions per channel

    # Pass 1: transposed conv as one K=4*Cin MXU matmul per phase.
    # (ConvTranspose bias omitted: cancelled exactly by BatchNorm mean subtraction.)
    # Write pre-activations through out_ref and accumulate per-channel sums.
    ssum = jnp.zeros((Cout, 1), jnp.float32)
    for p in range(4):
        acc = jnp.dot(w_ref[p], patch_ref[p],
                      preferred_element_type=jnp.float32)       # (Cout, M)
        out_ref[p] = acc
        ssum = ssum + jnp.sum(acc, axis=1, keepdims=True)
    mean = ssum / count                                          # (Cout, 1)

    # Pass 2: centered (two-pass) sum of squares -> biased variance.
    ssq = jnp.zeros((Cout, 1), jnp.float32)
    for p in range(4):
        d = out_ref[p] - mean
        ssq = ssq + jnp.sum(d * d, axis=1, keepdims=True)
    inv = jax.lax.rsqrt(ssq / count + EPS)
    scale = inv * gamma_ref[...]                                 # (Cout, 1)
    shift = beta_ref[...] - mean * scale                         # (Cout, 1)

    # Pass 3: BatchNorm affine + LeakyReLU(0.2), lane-dense, in place.
    for p in range(4):
        y = out_ref[p] * scale + shift
        out_ref[p] = jnp.where(y > 0, y, SLOPE * y)


@jax.jit
def dcgan_upconv_forward(x_nchw, w_pt, bias, gamma, beta):
    """x_nchw: (N, Cin, H, W); w_pt: (Cin, Cout, 4, 4) (PyTorch ConvTranspose2d layout).
    `bias` (ConvTranspose2d.bias) is accepted for API parity but is mathematically
    cancelled by training-mode BatchNorm, so it is not used.
    Returns (N, Cout, 2H, 2W)."""
    del bias
    N, Cin, H, W = x_nchw.shape
    Cout = w_pt.shape[1]
    M = N * H * W

    # Channel-major, spatially zero-padded input: (Cin, N, H+2, W+2).
    xc = jnp.pad(jnp.transpose(x_nchw, (1, 0, 2, 3)).astype(jnp.float32),
                 ((0, 0), (0, 0), (1, 1), (1, 1)))

    # Per-phase im2col.  K index = tap*Cin + cin with tap = jh*2 + jw;
    # lane index m = n*H*W + h*W + w.
    # Phase decomposition of the stride-2, pad-1, 4x4 transposed conv:
    #   out[2h+ry, 2w+rx] = sum_{jh,jw} x_pad[h+ry+jh, w+rx+jw] @ W[:, :, 3-ry-2jh, 3-rx-2jw]
    phases = []
    for ry in range(2):
        for rx in range(2):
            taps = [xc[:, :, ry + jh:ry + jh + H, rx + jw:rx + jw + W].reshape(Cin, M)
                    for jh in range(2) for jw in range(2)]
            phases.append(jnp.concatenate(taps, axis=0))         # (4*Cin, M)
    patches = jnp.stack(phases, axis=0)                          # (4, 4*Cin, M)

    # Matching tap-fused weights: (4, Cout, 4*Cin).
    wp = jnp.stack([
        jnp.concatenate(
            [w_pt[:, :, 3 - ry - 2 * jh, 3 - rx - 2 * jw].T      # (Cout, Cin)
             for jh in range(2) for jw in range(2)], axis=1)
        for ry in range(2) for rx in range(2)
    ], axis=0).astype(jnp.float32)

    g2 = gamma.reshape(Cout, 1).astype(jnp.float32)
    be2 = beta.reshape(Cout, 1).astype(jnp.float32)

    vmem = pl.BlockSpec(memory_space=pltpu.MemorySpace.VMEM)
    out = pl.pallas_call(
        dcgan_upconv_kernel,
        out_shape=jax.ShapeDtypeStruct((4, Cout, M), jnp.float32),
        in_specs=[vmem] * 4,
        out_specs=vmem,
        compiler_params=pltpu.CompilerParams(vmem_limit_bytes=32 * 1024 * 1024),
    )(patches, wp, g2, be2)

    # (4, Cout, M) -> (ry, rx, c, n, h, w) -> (n, c, h, ry, w, rx) -> NCHW (N, Cout, 2H, 2W)
    y = out.reshape(2, 2, Cout, N, H, W).transpose(3, 2, 4, 0, 5, 1)
    return y.reshape(N, Cout, 2 * H, 2 * W)


def reference_numpy(x, w, b, gamma, beta):
    """Direct PyTorch-semantics reference: ConvTranspose2d(4,2,1)+BN(train)+LeakyReLU(0.2)."""
    x = np.asarray(x, np.float64)
    w = np.asarray(w, np.float64)
    N, Cin, H, W = x.shape
    Cout = w.shape[1]
    y = np.zeros((N, Cout, 2 * H, 2 * W), np.float64)
    for n in range(N):
        for ih in range(H):
            for iw in range(W):
                for kh in range(4):
                    oh = 2 * ih - 1 + kh
                    if not (0 <= oh < 2 * H):
                        continue
                    for kw in range(4):
                        ow = 2 * iw - 1 + kw
                        if not (0 <= ow < 2 * W):
                            continue
                        y[n, :, oh, ow] += x[n, :, ih, iw] @ w[:, :, kh, kw]
    y += np.asarray(b, np.float64)[None, :, None, None]
    mean = y.mean(axis=(0, 2, 3), keepdims=True)
    var = y.var(axis=(0, 2, 3), keepdims=True)  # biased, as BN uses for normalization
    yn = (y - mean) / np.sqrt(var + EPS)
    yn = yn * np.asarray(gamma, np.float64)[None, :, None, None] \
         + np.asarray(beta, np.float64)[None, :, None, None]
    return np.where(yn > 0, yn, SLOPE * yn).astype(np.float32)


if __name__ == "__main__":
    nin, nout = 4, 8
    N, H, W = 2, 16, 16

    key = jax.random.PRNGKey(0)
    k1, k2, k3, k4, k5 = jax.random.split(key, 5)
    x = jax.random.normal(k1, (N, nin, H, W), jnp.float32)
    w = jax.random.normal(k2, (nin, nout, 4, 4), jnp.float32) * 0.1   # ConvTranspose2d.weight
    b = jax.random.normal(k3, (nout,), jnp.float32) * 0.1             # ConvTranspose2d.bias
    gamma = 1.0 + 0.1 * jax.random.normal(k4, (nout,), jnp.float32)   # BatchNorm2d.weight
    beta = 0.1 * jax.random.normal(k5, (nout,), jnp.float32)          # BatchNorm2d.bias

    y = dcgan_upconv_forward(x, w, b, gamma, beta)
    y = jax.block_until_ready(y)

    y_ref = reference_numpy(x, w, b, gamma, beta)
    np.testing.assert_allclose(np.asarray(y), y_ref, rtol=2e-3, atol=2e-3)
    print("KERNEL_OK")
</pallas_src>

<mosaic_0001>
module attributes {stable_mosaic.version = 11 : i64} {
  func.func @dcgan_upconv_kernel(%arg0: memref<4x16x512xf32, #tpu.memory_space<vmem>>, %arg1: memref<4x8x16xf32, #tpu.memory_space<vmem>>, %arg2: memref<8x1xf32, #tpu.memory_space<vmem>>, %arg3: memref<8x1xf32, #tpu.memory_space<vmem>>, %arg4: memref<4x8x512xf32, #tpu.memory_space<vmem>>) attributes {dimension_semantics = [], scalar_prefetch = 0 : i64, scratch_operands = 0 : i64, tpu.core_type = #tpu.core_type<tc>} {
    %cst = arith.constant 0.000000e+00 : f32
    %0 = vector.broadcast %cst : f32 to vector<8x1xf32>
    %c0 = arith.constant 0 : index
    %c0_0 = arith.constant 0 : index
    %c0_1 = arith.constant 0 : index
    %1 = vector.load %arg1[%c0, %c0_0, %c0_1] : memref<4x8x16xf32, #tpu.memory_space<vmem>>, vector<1x8x16xf32>
    %2 = vector.shape_cast %1 : vector<1x8x16xf32> to vector<8x16xf32>
    %c0_2 = arith.constant 0 : index
    %c0_3 = arith.constant 0 : index
    %c0_4 = arith.constant 0 : index
    %3 = vector.load %arg0[%c0_2, %c0_3, %c0_4] : memref<4x16x512xf32, #tpu.memory_space<vmem>>, vector<1x16x512xf32>
    %4 = vector.shape_cast %3 : vector<1x16x512xf32> to vector<16x512xf32>
    %cst_5 = arith.constant dense<0.000000e+00> : vector<8x512xf32>
    %5 = tpu.matmul %2, %4, %cst_5 {dimension_numbers = #tpu.dot_dimension_numbers<[1], [0], [0], [1], [0, 0, 1, 1], [], []>} : vector<8x16xf32>, vector<16x512xf32>, vector<8x512xf32> -> vector<8x512xf32>
    %c0_6 = arith.constant 0 : index
    %c0_7 = arith.constant 0 : index
    %c0_8 = arith.constant 0 : index
    %6 = vector.load %arg4[%c0_6, %c0_7, %c0_8] : memref<4x8x512xf32, #tpu.memory_space<vmem>>, vector<1x8x512xf32>
    %7 = vector.shape_cast %6 : vector<1x8x512xf32> to vector<8x512xf32>
    %8 = vector.shape_cast %5 : vector<8x512xf32> to vector<1x8x512xf32>
    tpu.vector_store %arg4[%c0_6, %c0_7, %c0_8], %8 {strides = array<i32>} : memref<4x8x512xf32, #tpu.memory_space<vmem>>, vector<1x8x512xf32>,
    %cst_9 = arith.constant dense<0.000000e+00> : vector<8xf32>
    %9 = vector.multi_reduction <add>, %5, %cst_9 [1] : vector<8x512xf32> to vector<8xf32>
    %10 = vector.shape_cast %9 : vector<8xf32> to vector<8x1xf32>
    %11 = arith.addf %0, %10 : vector<8x1xf32>
    %c1 = arith.constant 1 : index
    %c0_10 = arith.constant 0 : index
    %c0_11 = arith.constant 0 : index
    %12 = vector.load %arg1[%c1, %c0_10, %c0_11] : memref<4x8x16xf32, #tpu.memory_space<vmem>>, vector<1x8x16xf32>
    %13 = vector.shape_cast %12 : vector<1x8x16xf32> to vector<8x16xf32>
    %c1_12 = arith.constant 1 : index
    %c0_13 = arith.constant 0 : index
    %c0_14 = arith.constant 0 : index
    %14 = vector.load %arg0[%c1_12, %c0_13, %c0_14] : memref<4x16x512xf32, #tpu.memory_space<vmem>>, vector<1x16x512xf32>
    %15 = vector.shape_cast %14 : vector<1x16x512xf32> to vector<16x512xf32>
    %cst_15 = arith.constant dense<0.000000e+00> : vector<8x512xf32>
    %16 = tpu.matmul %13, %15, %cst_15 {dimension_numbers = #tpu.dot_dimension_numbers<[1], [0], [0], [1], [0, 0, 1, 1], [], []>} : vector<8x16xf32>, vector<16x512xf32>, vector<8x512xf32> -> vector<8x512xf32>
    %c1_16 = arith.constant 1 : index
    %c0_17 = arith.constant 0 : index
    %c0_18 = arith.constant 0 : index
    %17 = vector.load %arg4[%c1_16, %c0_17, %c0_18] : memref<4x8x512xf32, #tpu.memory_space<vmem>>, vector<1x8x512xf32>
    %18 = vector.shape_cast %17 : vector<1x8x512xf32> to vector<8x512xf32>
    %19 = vector.shape_cast %16 : vector<8x512xf32> to vector<1x8x512xf32>
    tpu.vector_store %arg4[%c1_16, %c0_17, %c0_18], %19 {strides = array<i32>} : memref<4x8x512xf32, #tpu.memory_space<vmem>>, vector<1x8x512xf32>,
    %cst_19 = arith.constant dense<0.000000e+00> : vector<8xf32>
    %20 = vector.multi_reduction <add>, %16, %cst_19 [1] : vector<8x512xf32> to vector<8xf32>
    %21 = vector.shape_cast %20 : vector<8xf32> to vector<8x1xf32>
    %22 = arith.addf %11, %21 : vector<8x1xf32>
    %c2 = arith.constant 2 : index
    %c0_20 = arith.constant 0 : index
    %c0_21 = arith.constant 0 : index
    %23 = vector.load %arg1[%c2, %c0_20, %c0_21] : memref<4x8x16xf32, #tpu.memory_space<vmem>>, vector<1x8x16xf32>
    %24 = vector.shape_cast %23 : vector<1x8x16xf32> to vector<8x16xf32>
    %c2_22 = arith.constant 2 : index
    %c0_23 = arith.constant 0 : index
    %c0_24 = arith.constant 0 : index
    %25 = vector.load %arg0[%c2_22, %c0_23, %c0_24] : memref<4x16x512xf32, #tpu.memory_space<vmem>>, vector<1x16x512xf32>
    %26 = vector.shape_cast %25 : vector<1x16x512xf32> to vector<16x512xf32>
    %cst_25 = arith.constant dense<0.000000e+00> : vector<8x512xf32>
    %27 = tpu.matmul %24, %26, %cst_25 {dimension_numbers = #tpu.dot_dimension_numbers<[1], [0], [0], [1], [0, 0, 1, 1], [], []>} : vector<8x16xf32>, vector<16x512xf32>, vector<8x512xf32> -> vector<8x512xf32>
    %c2_26 = arith.constant 2 : index
    %c0_27 = arith.constant 0 : index
    %c0_28 = arith.constant 0 : index
    %28 = vector.load %arg4[%c2_26, %c0_27, %c0_28] : memref<4x8x512xf32, #tpu.memory_space<vmem>>, vector<1x8x512xf32>
    %29 = vector.shape_cast %28 : vector<1x8x512xf32> to vector<8x512xf32>
    %30 = vector.shape_cast %27 : vector<8x512xf32> to vector<1x8x512xf32>
    tpu.vector_store %arg4[%c2_26, %c0_27, %c0_28], %30 {strides = array<i32>} : memref<4x8x512xf32, #tpu.memory_space<vmem>>, vector<1x8x512xf32>,
    %cst_29 = arith.constant dense<0.000000e+00> : vector<8xf32>
    %31 = vector.multi_reduction <add>, %27, %cst_29 [1] : vector<8x512xf32> to vector<8xf32>
    %32 = vector.shape_cast %31 : vector<8xf32> to vector<8x1xf32>
    %33 = arith.addf %22, %32 : vector<8x1xf32>
    %c3 = arith.constant 3 : index
    %c0_30 = arith.constant 0 : index
    %c0_31 = arith.constant 0 : index
    %34 = vector.load %arg1[%c3, %c0_30, %c0_31] : memref<4x8x16xf32, #tpu.memory_space<vmem>>, vector<1x8x16xf32>
    %35 = vector.shape_cast %34 : vector<1x8x16xf32> to vector<8x16xf32>
    %c3_32 = arith.constant 3 : index
    %c0_33 = arith.constant 0 : index
    %c0_34 = arith.constant 0 : index
    %36 = vector.load %arg0[%c3_32, %c0_33, %c0_34] : memref<4x16x512xf32, #tpu.memory_space<vmem>>, vector<1x16x512xf32>
    %37 = vector.shape_cast %36 : vector<1x16x512xf32> to vector<16x512xf32>
    %cst_35 = arith.constant dense<0.000000e+00> : vector<8x512xf32>
    %38 = tpu.matmul %35, %37, %cst_35 {dimension_numbers = #tpu.dot_dimension_numbers<[1], [0], [0], [1], [0, 0, 1, 1], [], []>} : vector<8x16xf32>, vector<16x512xf32>, vector<8x512xf32> -> vector<8x512xf32>
    %c3_36 = arith.constant 3 : index
    %c0_37 = arith.constant 0 : index
    %c0_38 = arith.constant 0 : index
    %39 = vector.load %arg4[%c3_36, %c0_37, %c0_38] : memref<4x8x512xf32, #tpu.memory_space<vmem>>, vector<1x8x512xf32>
    %40 = vector.shape_cast %39 : vector<1x8x512xf32> to vector<8x512xf32>
    %41 = vector.shape_cast %38 : vector<8x512xf32> to vector<1x8x512xf32>
    tpu.vector_store %arg4[%c3_36, %c0_37, %c0_38], %41 {strides = array<i32>} : memref<4x8x512xf32, #tpu.memory_space<vmem>>, vector<1x8x512xf32>,
    %cst_39 = arith.constant dense<0.000000e+00> : vector<8xf32>
    %42 = vector.multi_reduction <add>, %38, %cst_39 [1] : vector<8x512xf32> to vector<8xf32>
    %43 = vector.shape_cast %42 : vector<8xf32> to vector<8x1xf32>
    %44 = arith.addf %33, %43 : vector<8x1xf32>
    %cst_40 = arith.constant 2.048000e+03 : f32
    %45 = vector.broadcast %cst_40 : f32 to vector<8x1xf32>
    %46 = arith.divf %44, %45 : vector<8x1xf32>
    %cst_41 = arith.constant 0.000000e+00 : f32
    %47 = vector.broadcast %cst_41 : f32 to vector<8x1xf32>
    %c0_42 = arith.constant 0 : index
    %c0_43 = arith.constant 0 : index
    %c0_44 = arith.constant 0 : index
    %48 = vector.load %arg4[%c0_42, %c0_43, %c0_44] : memref<4x8x512xf32, #tpu.memory_space<vmem>>, vector<1x8x512xf32>
    %49 = vector.shape_cast %48 : vector<1x8x512xf32> to vector<8x512xf32>
    %50 = vector.broadcast %46 : vector<8x1xf32> to vector<8x512xf32>
    %51 = arith.subf %49, %50 : vector<8x512xf32>
    %52 = arith.mulf %51, %51 : vector<8x512xf32>
    %cst_45 = arith.constant dense<0.000000e+00> : vector<8xf32>
    %53 = vector.multi_reduction <add>, %52, %cst_45 [1] : vector<8x512xf32> to vector<8xf32>
    %54 = vector.shape_cast %53 : vector<8xf32> to vector<8x1xf32>
    %55 = arith.addf %47, %54 : vector<8x1xf32>
    %c1_46 = arith.constant 1 : index
    %c0_47 = arith.constant 0 : index
    %c0_48 = arith.constant 0 : index
    %56 = vector.load %arg4[%c1_46, %c0_47, %c0_48] : memref<4x8x512xf32, #tpu.memory_space<vmem>>, vector<1x8x512xf32>
    %57 = vector.shape_cast %56 : vector<1x8x512xf32> to vector<8x512xf32>
    %58 = vector.broadcast %46 : vector<8x1xf32> to vector<8x512xf32>
    %59 = arith.subf %57, %58 : vector<8x512xf32>
    %60 = arith.mulf %59, %59 : vector<8x512xf32>
    %cst_49 = arith.constant dense<0.000000e+00> : vector<8xf32>
    %61 = vector.multi_reduction <add>, %60, %cst_49 [1] : vector<8x512xf32> to vector<8xf32>
    %62 = vector.shape_cast %61 : vector<8xf32> to vector<8x1xf32>
    %63 = arith.addf %55, %62 : vector<8x1xf32>
    %c2_50 = arith.constant 2 : index
    %c0_51 = arith.constant 0 : index
    %c0_52 = arith.constant 0 : index
    %64 = vector.load %arg4[%c2_50, %c0_51, %c0_52] : memref<4x8x512xf32, #tpu.memory_space<vmem>>, vector<1x8x512xf32>
    %65 = vector.shape_cast %64 : vector<1x8x512xf32> to vector<8x512xf32>
    %66 = vector.broadcast %46 : vector<8x1xf32> to vector<8x512xf32>
    %67 = arith.subf %65, %66 : vector<8x512xf32>
    %68 = arith.mulf %67, %67 : vector<8x512xf32>
    %cst_53 = arith.constant dense<0.000000e+00> : vector<8xf32>
    %69 = vector.multi_reduction <add>, %68, %cst_53 [1] : vector<8x512xf32> to vector<8xf32>
    %70 = vector.shape_cast %69 : vector<8xf32> to vector<8x1xf32>
    %71 = arith.addf %63, %70 : vector<8x1xf32>
    %c3_54 = arith.constant 3 : index
    %c0_55 = arith.constant 0 : index
    %c0_56 = arith.constant 0 : index
    %72 = vector.load %arg4[%c3_54, %c0_55, %c0_56] : memref<4x8x512xf32, #tpu.memory_space<vmem>>, vector<1x8x512xf32>
    %73 = vector.shape_cast %72 : vector<1x8x512xf32> to vector<8x512xf32>
    %74 = vector.broadcast %46 : vector<8x1xf32> to vector<8x512xf32>
    %75 = arith.subf %73, %74 : vector<8x512xf32>
    %76 = arith.mulf %75, %75 : vector<8x512xf32>
    %cst_57 = arith.constant dense<0.000000e+00> : vector<8xf32>
    %77 = vector.multi_reduction <add>, %76, %cst_57 [1] : vector<8x512xf32> to vector<8xf32>
    %78 = vector.shape_cast %77 : vector<8xf32> to vector<8x1xf32>
    %79 = arith.addf %71, %78 : vector<8x1xf32>
    %cst_58 = arith.constant 2.048000e+03 : f32
    %80 = vector.broadcast %cst_58 : f32 to vector<8x1xf32>
    %81 = arith.divf %79, %80 : vector<8x1xf32>
    %cst_59 = arith.constant 9.99999974E-6 : f32
    %82 = vector.broadcast %cst_59 : f32 to vector<8x1xf32>
    %83 = arith.addf %81, %82 : vector<8x1xf32>
    %84 = math.rsqrt %83 : vector<8x1xf32>
    %c0_60 = arith.constant 0 : index
    %c0_61 = arith.constant 0 : index
    %85 = vector.load %arg2[%c0_60, %c0_61] : memref<8x1xf32, #tpu.memory_space<vmem>>, vector<8x1xf32>
    %86 = arith.mulf %84, %85 : vector<8x1xf32>
    %c0_62 = arith.constant 0 : index
    %c0_63 = arith.constant 0 : index
    %87 = vector.load %arg3[%c0_62, %c0_63] : memref<8x1xf32, #tpu.memory_space<vmem>>, vector<8x1xf32>
    %88 = arith.mulf %46, %86 : vector<8x1xf32>
    %89 = arith.subf %87, %88 : vector<8x1xf32>
    %c0_64 = arith.constant 0 : index
    %c0_65 = arith.constant 0 : index
    %c0_66 = arith.constant 0 : index
    %90 = vector.load %arg4[%c0_64, %c0_65, %c0_66] : memref<4x8x512xf32, #tpu.memory_space<vmem>>, vector<1x8x512xf32>
    %91 = vector.shape_cast %90 : vector<1x8x512xf32> to vector<8x512xf32>
    %92 = vector.broadcast %86 : vector<8x1xf32> to vector<8x512xf32>
    %93 = arith.mulf %91, %92 : vector<8x512xf32>
    %94 = vector.broadcast %89 : vector<8x1xf32> to vector<8x512xf32>
    %95 = arith.addf %93, %94 : vector<8x512xf32>
    %cst_67 = arith.constant 0.000000e+00 : f32
    %96 = vector.broadcast %cst_67 : f32 to vector<8x512xf32>
    %97 = arith.cmpf ogt, %95, %96 : vector<8x512xf32>
    %cst_68 = arith.constant 2.000000e-01 : f32
    %98 = vector.broadcast %cst_68 : f32 to vector<8x512xf32>
    %99 = arith.mulf %98, %95 : vector<8x512xf32>
    %100 = arith.select %97, %95, %99 : vector<8x512xi1>, vector<8x512xf32>
    %c0_69 = arith.constant 0 : index
    %c0_70 = arith.constant 0 : index
    %c0_71 = arith.constant 0 : index
    %101 = vector.load %arg4[%c0_69, %c0_70, %c0_71] : memref<4x8x512xf32, #tpu.memory_space<vmem>>, vector<1x8x512xf32>
    %102 = vector.shape_cast %101 : vector<1x8x512xf32> to vector<8x512xf32>
    %103 = vector.shape_cast %100 : vector<8x512xf32> to vector<1x8x512xf32>
    tpu.vector_store %arg4[%c0_69, %c0_70, %c0_71], %103 {strides = array<i32>} : memref<4x8x512xf32, #tpu.memory_space<vmem>>, vector<1x8x512xf32>,
    %c1_72 = arith.constant 1 : index
    %c0_73 = arith.constant 0 : index
    %c0_74 = arith.constant 0 : index
    %104 = vector.load %arg4[%c1_72, %c0_73, %c0_74] : memref<4x8x512xf32, #tpu.memory_space<vmem>>, vector<1x8x512xf32>
    %105 = vector.shape_cast %104 : vector<1x8x512xf32> to vector<8x512xf32>
    %106 = vector.broadcast %86 : vector<8x1xf32> to vector<8x512xf32>
    %107 = arith.mulf %105, %106 : vector<8x512xf32>
    %108 = vector.broadcast %89 : vector<8x1xf32> to vector<8x512xf32>
    %109 = arith.addf %107, %108 : vector<8x512xf32>
    %cst_75 = arith.constant 0.000000e+00 : f32
    %110 = vector.broadcast %cst_75 : f32 to vector<8x512xf32>
    %111 = arith.cmpf ogt, %109, %110 : vector<8x512xf32>
    %cst_76 = arith.constant 2.000000e-01 : f32
    %112 = vector.broadcast %cst_76 : f32 to vector<8x512xf32>
    %113 = arith.mulf %112, %109 : vector<8x512xf32>
    %114 = arith.select %111, %109, %113 : vector<8x512xi1>, vector<8x512xf32>
    %c1_77 = arith.constant 1 : index
    %c0_78 = arith.constant 0 : index
    %c0_79 = arith.constant 0 : index
    %115 = vector.load %arg4[%c1_77, %c0_78, %c0_79] : memref<4x8x512xf32, #tpu.memory_space<vmem>>, vector<1x8x512xf32>
    %116 = vector.shape_cast %115 : vector<1x8x512xf32> to vector<8x512xf32>
    %117 = vector.shape_cast %114 : vector<8x512xf32> to vector<1x8x512xf32>
    tpu.vector_store %arg4[%c1_77, %c0_78, %c0_79], %117 {strides = array<i32>} : memref<4x8x512xf32, #tpu.memory_space<vmem>>, vector<1x8x512xf32>,
    %c2_80 = arith.constant 2 : index
    %c0_81 = arith.constant 0 : index
    %c0_82 = arith.constant 0 : index
    %118 = vector.load %arg4[%c2_80, %c0_81, %c0_82] : memref<4x8x512xf32, #tpu.memory_space<vmem>>, vector<1x8x512xf32>
    %119 = vector.shape_cast %118 : vector<1x8x512xf32> to vector<8x512xf32>
    %120 = vector.broadcast %86 : vector<8x1xf32> to vector<8x512xf32>
    %121 = arith.mulf %119, %120 : vector<8x512xf32>
    %122 = vector.broadcast %89 : vector<8x1xf32> to vector<8x512xf32>
    %123 = arith.addf %121, %122 : vector<8x512xf32>
    %cst_83 = arith.constant 0.000000e+00 : f32
    %124 = vector.broadcast %cst_83 : f32 to vector<8x512xf32>
    %125 = arith.cmpf ogt, %123, %124 : vector<8x512xf32>
    %cst_84 = arith.constant 2.000000e-01 : f32
    %126 = vector.broadcast %cst_84 : f32 to vector<8x512xf32>
    %127 = arith.mulf %126, %123 : vector<8x512xf32>
    %128 = arith.select %125, %123, %127 : vector<8x512xi1>, vector<8x512xf32>
    %c2_85 = arith.constant 2 : index
    %c0_86 = arith.constant 0 : index
    %c0_87 = arith.constant 0 : index
    %129 = vector.load %arg4[%c2_85, %c0_86, %c0_87] : memref<4x8x512xf32, #tpu.memory_space<vmem>>, vector<1x8x512xf32>
    %130 = vector.shape_cast %129 : vector<1x8x512xf32> to vector<8x512xf32>
    %131 = vector.shape_cast %128 : vector<8x512xf32> to vector<1x8x512xf32>
    tpu.vector_store %arg4[%c2_85, %c0_86, %c0_87], %131 {strides = array<i32>} : memref<4x8x512xf32, #tpu.memory_space<vmem>>, vector<1x8x512xf32>,
    %c3_88 = arith.constant 3 : index
    %c0_89 = arith.constant 0 : index
    %c0_90 = arith.constant 0 : index
    %132 = vector.load %arg4[%c3_88, %c0_89, %c0_90] : memref<4x8x512xf32, #tpu.memory_space<vmem>>, vector<1x8x512xf32>
    %133 = vector.shape_cast %132 : vector<1x8x512xf32> to vector<8x512xf32>
    %134 = vector.broadcast %86 : vector<8x1xf32> to vector<8x512xf32>
    %135 = arith.mulf %133, %134 : vector<8x512xf32>
    %136 = vector.broadcast %89 : vector<8x1xf32> to vector<8x512xf32>
    %137 = arith.addf %135, %136 : vector<8x512xf32>
    %cst_91 = arith.constant 0.000000e+00 : f32
    %138 = vector.broadcast %cst_91 : f32 to vector<8x512xf32>
    %139 = arith.cmpf ogt, %137, %138 : vector<8x512xf32>
    %cst_92 = arith.constant 2.000000e-01 : f32
    %140 = vector.broadcast %cst_92 : f32 to vector<8x512xf32>
    %141 = arith.mulf %140, %137 : vector<8x512xf32>
    %142 = arith.select %139, %137, %141 : vector<8x512xi1>, vector<8x512xf32>
    %c3_93 = arith.constant 3 : index
    %c0_94 = arith.constant 0 : index
    %c0_95 = arith.constant 0 : index
    %143 = vector.load %arg4[%c3_93, %c0_94, %c0_95] : memref<4x8x512xf32, #tpu.memory_space<vmem>>, vector<1x8x512xf32>
    %144 = vector.shape_cast %143 : vector<1x8x512xf32> to vector<8x512xf32>
    %145 = vector.shape_cast %142 : vector<8x512xf32> to vector<1x8x512xf32>
    tpu.vector_store %arg4[%c3_93, %c0_94, %c0_95], %145 {strides = array<i32>} : memref<4x8x512xf32, #tpu.memory_space<vmem>>, vector<1x8x512xf32>,
    return
  }
}

</mosaic_0001>

<bundles_post_ra>
// kernel: dcgan_upconv_forward.1
= control target key start
LH: loop header
LB: loop body
LE: loop exit
PB: predicated region body
PF: predicated region fallthrough
CT: control target
= control target key end

     0   :  { %v976_v3 = vmov 0.0   ;;  %vm26_vm0 = vcmask 130048   ;;  %s1285_s0 = inlined_call_operand.vmem [shape: f32[4,16,512], index: 0, kind: input, shape index: {}]   ;;  %s1286_s1 = inlined_call_operand.vmem [shape: f32[4,8,16], index: 1, kind: input, shape index: {}]   ;;  %s1287_s2 = inlined_call_operand.vmem [shape: f32[8,1], index: 2, kind: input, shape index: {}]   ;;  %s1288_s3 = inlined_call_operand.vmem [shape: f32[8,1], index: 3, kind: input, shape index: {}]   ;;  %s1289_s4 = inlined_call_operand.vmem [shape: f32[4,8,512], index: 4, kind: output, shape index: {}]  }
   0x1   :  { %v23_v0 = vld [vmem:[%s1285_s0 + $0x28] sm:$0xff]  ;;  %v22_v1 = vld [vmem:[%s1285_s0 + $0x20] sm:$0xff]  ;;  %94 = vmatprep.mubr.f32.mxu0 %v976_v3  ;;  %165 = vmatprep.mubr.f32.mxu1 %v976_v3  ;;  %v25_v5 = vld [vmem:[%s1285_s0 + $0x38] sm:$0xff] }
   0x2   :  { %v19_v2 = vld [vmem:[%s1285_s0 + $0x8] sm:$0xff]  ;;  %58 = vmatprep.subr.mxu0 %v23_v0  ;;  %v18_v4 = vld [vmem:[%s1285_s0] sm:$0xff]  ;;  %129 = vmatprep.subr.mxu1 %v25_v5  ;;  %v24_v7 = vld [vmem:[%s1285_s0 + $0x30] sm:$0xff] }
   0x3   :  { %v17_v6 = vld [vmem:[%s1286_s1] sm:$0xff]  ;;  %59 = vmatpush1.msra.mxu0 %v22_v1  ;;  %v895_v8 = vld [vmem:[%s1285_s0 + $0x68] sm:$0xff]  ;;  %v21_v9 = vld [vmem:[%s1285_s0 + $0x18] sm:$0xff]  ;;  %130 = vmatpush1.msra.mxu1 %v24_v7 }
   0x4   :  { %60 = vmatprep.subr.mxu0 %v19_v2  ;;  %v894_v10 = vld [vmem:[%s1285_s0 + $0x60] sm:$0xff]  ;;  %v20_v11 = vld [vmem:[%s1285_s0 + $0x10] sm:$0xff]  ;;  %131 = vmatprep.subr.mxu1 %v21_v9  ;;  %v891_v12 = vld [vmem:[%s1285_s0 + $0x48] sm:$0xff] }
   0x5   :  { %61 = vmatpush1.msra.mxu0 %v18_v4  ;;  %v890_v13 = vld [vmem:[%s1285_s0 + $0x40] sm:$0xff]  ;;  %132 = vmatpush1.msra.mxu1 %v20_v11  ;;  %v897_v14 = vld [vmem:[%s1285_s0 + $0x78] sm:$0xff]  ;;  %v889_v15 = vld [vmem:[%s1286_s1 + $0x8] sm:$0xff] }
   0x6   :  { %887 = vmatmul.mubr.msk.f32.vlgmr.msra.gmra.mxu0 %vm26_vm0, %v17_v6  ;;  %224 = vmatprep.subr.mxu0 %v895_v8  ;;  %v896_v16 = vld [vmem:[%s1285_s0 + $0x70] sm:$0xff]  ;;  %v910_v17 = vld [vmem:[%s1285_s0 + $0xa8] sm:$0xff]  ;;  %v893_v18 = vld [vmem:[%s1285_s0 + $0x58] sm:$0xff] }
   0x7   :  { %225 = vmatpush1.msra.mxu0 %v894_v10  ;;  %888 = vmatmul.mubr.msk.f32.vlgmr.msra.gmra.mxu1 %vm26_vm0, %v17_v6  ;;  %v909_v19 = vld [vmem:[%s1285_s0 + $0xa0] sm:$0xff]  ;;  %v892_v20 = vld [vmem:[%s1285_s0 + $0x50] sm:$0xff]  ;;  %v906_v21 = vld [vmem:[%s1285_s0 + $0x88] sm:$0xff] }
   0x8   :  { %226 = vmatprep.subr.mxu0 %v891_v12  ;;  %260 = vmatprep.mubr.f32.mxu0 %v976_v3  ;;  %v905_v22 = vld [vmem:[%s1285_s0 + $0x80] sm:$0xff]  ;;  %v912_v23 = vld [vmem:[%s1285_s0 + $0xb8] sm:$0xff]  ;;  %v904_v24 = vld [vmem:[%s1286_s1 + $0x10] sm:$0xff] }
   0x9   :  { %227 = vmatpush1.msra.mxu0 %v890_v13  ;;  %295 = vmatprep.subr.mxu1 %v897_v14  ;;  %v911_v25 = vld [vmem:[%s1285_s0 + $0xb0] sm:$0xff]  ;;  %v925_v26 = vld [vmem:[%s1285_s0 + $0xe8] sm:$0xff]  ;;  %v908_v27 = vld [vmem:[%s1285_s0 + $0x98] sm:$0xff] }
   0xa   :  { %898 = vmatmul.mubr.msk.f32.vlgmr.msra.gmra.mxu0 %vm26_vm0, %v889_v15  ;;  %296 = vmatpush1.msra.mxu1 %v896_v16  ;;  %v924_v28 = vld [vmem:[%s1285_s0 + $0xe0] sm:$0xff]  ;;  %v907_v29 = vld [vmem:[%s1285_s0 + $0x90] sm:$0xff]  ;;  %v921_v30 = vld [vmem:[%s1285_s0 + $0xc8] sm:$0xff] }
   0xb   :  { %391 = vmatprep.subr.mxu0 %v910_v17  ;;  %297 = vmatprep.subr.mxu1 %v893_v18  ;;  %v920_v31 = vld [vmem:[%s1285_s0 + $0xc0] sm:$0xff]  ;;  %v927_v32 = vld [vmem:[%s1285_s0 + $0xf8] sm:$0xff]  ;;  %v926_v34 = vld [vmem:[%s1285_s0 + $0xf0] sm:$0xff] }
   0xc   :  { %392 = vmatpush1.msra.mxu0 %v909_v19  ;;  %298 = vmatpush1.msra.mxu1 %v892_v20  ;;  %v919_v33 = vld [vmem:[%s1286_s1 + $0x18] sm:$0xff]  ;;  %v922_v36 = vld [vmem:[%s1285_s0 + $0xd0] sm:$0xff] }
   0xd   :  { %331 = vmatprep.mubr.f32.mxu1 %v976_v3  ;;  %393 = vmatprep.subr.mxu0 %v906_v21  ;;  %v923_v35 = vld [vmem:[%s1285_s0 + $0xd8] sm:$0xff] }
   0xe   :  { %899 = vmatmul.mubr.msk.f32.vlgmr.msra.gmra.mxu1 %vm26_vm0, %v889_v15  ;;  %394 = vmatpush1.msra.mxu0 %v905_v22 }
   0xf   :  { %427 = vmatprep.mubr.f32.mxu0 %v976_v3  ;;  %462 = vmatprep.subr.mxu1 %v912_v23 }
  0x10   :  { %913 = vmatmul.mubr.msk.f32.vlgmr.msra.gmra.mxu0 %vm26_vm0, %v904_v24  ;;  %463 = vmatpush1.msra.mxu1 %v911_v25 }
  0x11   :  { %558 = vmatprep.subr.mxu0 %v925_v26  ;;  %464 = vmatprep.subr.mxu1 %v908_v27 }
  0x12   :  { %559 = vmatpush1.msra.mxu0 %v924_v28  ;;  %465 = vmatpush1.msra.mxu1 %v907_v29 }
  0x13   :  { %498 = vmatprep.mubr.f32.mxu1 %v976_v3  ;;  %560 = vmatprep.subr.mxu0 %v921_v30 }
  0x14   :  { %914 = vmatmul.mubr.msk.f32.vlgmr.msra.gmra.mxu1 %vm26_vm0, %v904_v24  ;;  %561 = vmatpush1.msra.mxu0 %v920_v31 }
  0x15   :  { %594 = vmatprep.mubr.f32.mxu0 %v976_v3  ;;  %629 = vmatprep.subr.mxu1 %v927_v32 }
  0x16   :  { %928 = vmatmul.mubr.msk.f32.vlgmr.msra.gmra.mxu0 %vm26_vm0, %v919_v33  ;;  %630 = vmatpush1.msra.mxu1 %v926_v34 }
  0x17   :  { %665 = vmatprep.mubr.f32.mxu1 %v976_v3  ;;  %631 = vmatprep.subr.mxu1 %v923_v35 }
  0x18   :  { %632 = vmatpush1.msra.mxu1 %v922_v36 }
  0x19   :  { %929 = vmatmul.mubr.msk.f32.vlgmr.msra.gmra.mxu1 %vm26_vm0, %v919_v33 }
  0xc6   :  { %v1127_v37 = vpop.f32.mrf.mxu0 }
  0xc7   :  { %v1131_v39 = vpop.f32.mrf.mxu1 }
  0xc8   :  { %v1129_v38 = vpop.f32.mrf.mxu0 }
  0xc9   :  { %v176_v40 = vadd.f32 %v1129_v38, %v1127_v37  ;;  %v1137_v42 = vpop.f32.mrf.mxu1 }
  0xca   :  { %v1135_v41 = vpop.f32.mrf.mxu0 }
  0xcb   :  { %v177_v43 = vadd.f32 %v176_v40, %v1131_v39 }
  0xcc   :  { %v1140_v44 = vpop.f32.mrf.mxu0 }
  0xcd   :  { %v343_v45 = vadd.f32 %v1140_v44, %v1135_v41  ;;  %v178_v46 = vadd.f32 %v177_v43, %v1137_v42 }
  0xce   :  { %v1145_v47 = vpop.f32.mrf.mxu1 }
  0xcf   :  { %v344_v48 = vadd.f32 %v343_v45, %v1145_v47  ;;  %179 = vadd.xlane.f32.xlu0 %v178_v46 }
  0xd0   :  { %v1148_v49 = vpop.f32.mrf.mxu0  ;;  %v1150_v50 = vpop.f32.mrf.mxu1 }
  0xd1   :  { %v345_v51 = vadd.f32 %v344_v48, %v1150_v50 }
  0xd2   :  { %v1153_v52 = vpop.f32.mrf.mxu0 }
  0xd3   :  { %v510_v53 = vadd.f32 %v1153_v52, %v1148_v49  ;;  %346 = vadd.xlane.f32.xlu0 %v345_v51 }
  0xd4   :  { %v1157_v54 = vpop.f32.mrf.mxu1 }
  0xd5   :  { %v511_v55 = vadd.f32 %v510_v53, %v1157_v54 }
  0xd6   :  { %v1160_v56 = vpop.f32.mrf.mxu0  ;;  %v1162_v57 = vpop.f32.mrf.mxu1 }
  0xd7   :  { %v512_v58 = vadd.f32 %v511_v55, %v1162_v57 }
  0xd8   :  { %v1165_v59 = vpop.f32.mrf.mxu0 }
  0xd9   :  { %v677_v60 = vadd.f32 %v1165_v59, %v1160_v56  ;;  %513 = vadd.xlane.f32.xlu1 %v512_v58  ;;  %v1169_v61 = vpop.f32.mrf.mxu1 }
  0xdb   :  { %v678_v62 = vadd.f32 %v677_v60, %v1169_v61  ;;  %v1172_v63 = vpop.f32.mrf.mxu1 }
  0xdd   :  { %v679_v0 = vadd.f32 %v678_v62, %v1172_v63 }
  0xdf   :  { %680 = vadd.xlane.f32.xlu1 %v679_v0 }
 0x158   :  { %v180_v1 = vpop.xlane.xlu0 %179 }
 0x15c   :  { %v347_v2 = vpop.xlane.xlu0 %346 }
 0x15d   :  { %v348_v4 = vadd.f32 %v347_v2, %v180_v1 }
 0x162   :  { %v514_v3 = vpop.xlane.xlu1 %513 }
 0x163   :  { %v515_v5 = vadd.f32 %v514_v3, %v348_v4 }
 0x168   :  { %v681_v6 = vpop.xlane.xlu1 %680 }
 0x169   :  { %v682_v7 = vadd.f32 %v681_v6, %v515_v5  ;;  %v977_v5 = vmov 0  }
 0x16a   :  { %972 = vset.pattern.permute.xlu0 %v977_v5  ;;  %973 = vset.pattern.permute.xlu1 %v977_v5 }
 0x16b   :  { %v1175_v8 = vmul.f32 0.00048828125, %v682_v7 }
 0x16d   :  { %v707_v9 = vsub.f32 %v1135_v41, %v1175_v8  ;;  %v708_v10 = vsub.f32 %v1140_v44, %v1175_v8  ;;  %v709_v11 = vsub.f32 %v1145_v47, %v1175_v8  ;;  %v710_v12 = vsub.f32 %v1150_v50, %v1175_v8 }
 0x16e   :  { %v689_v13 = vsub.f32 %v1127_v37, %v1175_v8  ;;  %v690_v14 = vsub.f32 %v1129_v38, %v1175_v8  ;;  %v691_v15 = vsub.f32 %v1131_v39, %v1175_v8  ;;  %v692_v16 = vsub.f32 %v1137_v42, %v1175_v8 }
 0x16f   :  { %v711_v17 = vmul.f32 %v707_v9, %v707_v9  ;;  %v712_v18 = vmul.f32 %v708_v10, %v708_v10  ;;  %v713_v19 = vmul.f32 %v709_v11, %v709_v11  ;;  %v714_v20 = vmul.f32 %v710_v12, %v710_v12 }
 0x170   :  { %v693_v21 = vmul.f32 %v689_v13, %v689_v13  ;;  %v694_v22 = vmul.f32 %v690_v14, %v690_v14  ;;  %v695_v23 = vmul.f32 %v691_v15, %v691_v15  ;;  %v743_v25 = vsub.f32 %v1160_v56, %v1175_v8 }
 0x171   :  { %v715_v24 = vadd.f32 %v712_v18, %v711_v17  ;;  %v744_v26 = vsub.f32 %v1165_v59, %v1175_v8  ;;  %v745_v27 = vsub.f32 %v1169_v61, %v1175_v8  ;;  %v696_v28 = vmul.f32 %v692_v16, %v692_v16  ;;  %v760_v16 = vld [vmem:[%s1287_s2] sm:$0xff] }
 0x172   :  { %v697_v29 = vadd.f32 %v694_v22, %v693_v21  ;;  %v725_v30 = vsub.f32 %v1148_v49, %v1175_v8  ;;  %v726_v31 = vsub.f32 %v1153_v52, %v1175_v8  ;;  %v746_v33 = vsub.f32 %v1172_v63, %v1175_v8 }
 0x173   :  { %v716_v32 = vadd.f32 %v715_v24, %v713_v19  ;;  %v747_v34 = vmul.f32 %v743_v25, %v743_v25  ;;  %v748_v35 = vmul.f32 %v744_v26, %v744_v26  ;;  %v749_v40 = vmul.f32 %v745_v27, %v745_v27  ;;  %v762_v19 = vld [vmem:[%s1288_s3] sm:$0xff] }
 0x174   :  { %v698_v36 = vadd.f32 %v697_v29, %v695_v23  ;;  %v727_v43 = vsub.f32 %v1157_v54, %v1175_v8  ;;  %v728_v45 = vsub.f32 %v1162_v57, %v1175_v8  ;;  %v729_v51 = vmul.f32 %v725_v30, %v725_v30 }
 0x175   :  { %v717_v46 = vadd.f32 %v716_v32, %v714_v20  ;;  %v751_v48 = vadd.f32 %v748_v35, %v747_v34  ;;  %v730_v53 = vmul.f32 %v726_v31, %v726_v31  ;;  %v750_v58 = vmul.f32 %v746_v33, %v746_v33 }
 0x176   :  { %v699_v55 = vadd.f32 %v698_v36, %v696_v28  ;;  %v731_v62 = vmul.f32 %v727_v43, %v727_v43  ;;  %v732_v2 = vmul.f32 %v728_v45, %v728_v45 }
 0x177   :  { %718 = vadd.xlane.f32.xlu1 %v717_v46  ;;  %v752_v60 = vadd.f32 %v751_v48, %v749_v40  ;;  %v733_v0 = vadd.f32 %v730_v53, %v729_v51 }
 0x178   :  { %700 = vadd.xlane.f32.xlu0 %v699_v55 }
 0x179   :  { %v753_v1 = vadd.f32 %v752_v60, %v750_v58  ;;  %v734_v3 = vadd.f32 %v733_v0, %v731_v62 }
 0x17b   :  { %754 = vadd.xlane.f32.xlu1 %v753_v1  ;;  %v735_v4 = vadd.f32 %v734_v3, %v732_v2 }
 0x17d   :  { %736 = vadd.xlane.f32.xlu0 %v735_v4 }
 0x200   :  { %v719_v7 = vpop.xlane.xlu1 %718 }
 0x201   :  { %v701_v6 = vpop.xlane.xlu0 %700 }
 0x202   :  { %v720_v9 = vadd.f32 %v719_v7, %v701_v6 }
 0x204   :  { %v755_v12 = vpop.xlane.xlu1 %754 }
 0x206   :  { %v737_v10 = vpop.xlane.xlu0 %736 }
 0x207   :  { %v738_v11 = vadd.f32 %v737_v10, %v720_v9 }
 0x209   :  { %v756_v13 = vadd.f32 %v755_v12, %v738_v11 }
 0x20b   :  { %v757_v14 = vmul.f32 0.00048828125, %v756_v13 }
 0x20d   :  { %v758_v15 = vadd.f32 1e-05, %v757_v14 }
 0x20f   :  { %974 = vrsqrt.f32 %v758_v15 }
 0x21c   :  { %v975_v17 = vpop.eup %974 }
 0x21d   :  { %v761_v18 = vmul.f32 %v975_v17, %v760_v16 }
 0x21f   :  { %767 = vperm.xlu0 %972, %v761_v18   ;;  %v763_v20 = vmul.f32 %v761_v18, %v1175_v8 }
 0x221   :  { %v764_v21 = vsub.f32 %v762_v19, %v763_v20 }
 0x223   :  { %776 = vperm.xlu1 %973, %v764_v21  }
 0x29a   :  { %v768_v22 = vpop.permute.xlu0 %767 }
 0x29b   :  { %v770_v23 = vmul.f32 %v768_v22, %v1127_v37  ;;  %v771_v24 = vmul.f32 %v768_v22, %v1129_v38  ;;  %v772_v25 = vmul.f32 %v768_v22, %v1131_v39  ;;  %v773_v26 = vmul.f32 %v768_v22, %v1137_v42 }
 0x29c   :  { %v803_v27 = vmul.f32 %v768_v22, %v1135_v41  ;;  %v804_v28 = vmul.f32 %v768_v22, %v1140_v44  ;;  %v805_v29 = vmul.f32 %v768_v22, %v1145_v47  ;;  %v806_v30 = vmul.f32 %v768_v22, %v1150_v50 }
 0x29d   :  { %v831_v8 = vmul.f32 %v768_v22, %v1148_v49  ;;  %v832_v31 = vmul.f32 %v768_v22, %v1153_v52  ;;  %v833_v37 = vmul.f32 %v768_v22, %v1157_v54  ;;  %v834_v38 = vmul.f32 %v768_v22, %v1162_v57 }
 0x29e   :  { %v859_v39 = vmul.f32 %v768_v22, %v1160_v56  ;;  %v860_v42 = vmul.f32 %v768_v22, %v1165_v59  ;;  %v861_v41 = vmul.f32 %v768_v22, %v1169_v61  ;;  %v862_v44 = vmul.f32 %v768_v22, %v1172_v63  ;;  %v777_v32 = vpop.permute.xlu1 %776 }
 0x29f   :  { %v779_v47 = vadd.f32 %v777_v32, %v770_v23  ;;  %v780_v33 = vadd.f32 %v777_v32, %v771_v24  ;;  %v781_v50 = vadd.f32 %v777_v32, %v772_v25  ;;  %v782_v34 = vadd.f32 %v777_v32, %v773_v26 }
 0x2a0   :  { %v807_v49 = vadd.f32 %v803_v27, %v777_v32  ;;  %v808_v35 = vadd.f32 %v804_v28, %v777_v32  ;;  %v809_v52 = vadd.f32 %v805_v29, %v777_v32  ;;  %v810_v36 = vadd.f32 %v806_v30, %v777_v32 }
 0x2a1   :  { %vm783_vm1 = vcmp.gt.f32.partialorder %v779_v47, 0.0  ;;  %vm784_vm2 = vcmp.gt.f32.partialorder %v780_v33, 0.0  ;;  %vm785_vm3 = vcmp.gt.f32.partialorder %v781_v50, 0.0  ;;  %vm786_vm4 = vcmp.gt.f32.partialorder %v782_v34, 0.0 }
 0x2a2   :  { %v787_v54 = vmul.f32 0.2, %v779_v47  ;;  %v788_v56 = vmul.f32 0.2, %v780_v33  ;;  %v789_v57 = vmul.f32 0.2, %v781_v50  ;;  %v835_v59 = vadd.f32 %v831_v8, %v777_v32 }
 0x2a3   :  { %v790_v61 = vmul.f32 0.2, %v782_v34  ;;  %vm811_vm5 = vcmp.gt.f32.partialorder %v807_v49, 0.0  ;;  %vm812_vm6 = vcmp.gt.f32.partialorder %v808_v35, 0.0  ;;  %vm813_vm7 = vcmp.gt.f32.partialorder %v809_v52, 0.0 }
 0x2a4   :  { %v791_v63 = vsel %vm783_vm1, %v779_v47, %v787_v54  ;;  %v792_v40 = vsel %vm784_vm2, %v780_v33, %v788_v56  ;;  %v793_v43 = vsel %vm785_vm3, %v781_v50, %v789_v57  ;;  %vm814_vm8 = vcmp.gt.f32.partialorder %v810_v36, 0.0 }
 0x2a5   :  { %v794_v45 = vsel %vm786_vm4, %v782_v34, %v790_v61  ;;  %795 = vst [vmem:[%s1289_s4] sm:$0xff] %v791_v63  ;;  %796 = vst [vmem:[%s1289_s4 + $0x8] sm:$0xff] %v792_v40  ;;  %v815_v46 = vmul.f32 0.2, %v807_v49  ;;  %v816_v48 = vmul.f32 0.2, %v808_v35  ;;  %v836_v55 = vadd.f32 %v832_v31, %v777_v32 }
 0x2a6   :  { %797 = vst [vmem:[%s1289_s4 + $0x10] sm:$0xff] %v793_v43  ;;  %v817_v51 = vmul.f32 0.2, %v809_v52  ;;  %798 = vst [vmem:[%s1289_s4 + $0x18] sm:$0xff] %v794_v45  ;;  %v818_v53 = vmul.f32 0.2, %v810_v36  ;;  %v837_v58 = vadd.f32 %v833_v37, %v777_v32  ;;  %v838_v60 = vadd.f32 %v834_v38, %v777_v32 }
 0x2a7   :  { %v819_v62 = vsel %vm811_vm5, %v807_v49, %v815_v46  ;;  %v820_v0 = vsel %vm812_vm6, %v808_v35, %v816_v48  ;;  %vm839_vm9 = vcmp.gt.f32.partialorder %v835_v59, 0.0  ;;  %vm840_vm10 = vcmp.gt.f32.partialorder %v836_v55, 0.0 }
 0x2a8   :  { %v821_v1 = vsel %vm813_vm7, %v809_v52, %v817_v51  ;;  %v822_v2 = vsel %vm814_vm8, %v810_v36, %v818_v53  ;;  %950 = vst [vmem:[%s1289_s4 + $0x20] sm:$0xff] %v819_v62  ;;  %951 = vst [vmem:[%s1289_s4 + $0x28] sm:$0xff] %v820_v0  ;;  %vm841_vm11 = vcmp.gt.f32.partialorder %v837_v58, 0.0  ;;  %vm842_vm12 = vcmp.gt.f32.partialorder %v838_v60, 0.0 }
 0x2a9   :  { %952 = vst [vmem:[%s1289_s4 + $0x30] sm:$0xff] %v821_v1  ;;  %953 = vst [vmem:[%s1289_s4 + $0x38] sm:$0xff] %v822_v2  ;;  %v843_v3 = vmul.f32 0.2, %v835_v59  ;;  %v844_v4 = vmul.f32 0.2, %v836_v55  ;;  %v863_v6 = vadd.f32 %v859_v39, %v777_v32  ;;  %v864_v9 = vadd.f32 %v860_v42, %v777_v32 }
 0x2aa   :  { %v845_v5 = vmul.f32 0.2, %v837_v58  ;;  %v846_v7 = vmul.f32 0.2, %v838_v60  ;;  %v865_v10 = vadd.f32 %v861_v41, %v777_v32  ;;  %v866_v11 = vadd.f32 %v862_v44, %v777_v32 }
 0x2ab   :  { %v847_v12 = vsel %vm839_vm9, %v835_v59, %v843_v3  ;;  %v848_v13 = vsel %vm840_vm10, %v836_v55, %v844_v4  ;;  %vm867_vm13 = vcmp.gt.f32.partialorder %v863_v6, 0.0  ;;  %vm868_vm14 = vcmp.gt.f32.partialorder %v864_v9, 0.0 }
 0x2ac   :  { %v849_v14 = vsel %vm841_vm11, %v837_v58, %v845_v5  ;;  %v850_v15 = vsel %vm842_vm12, %v838_v60, %v846_v7  ;;  %958 = vst [vmem:[%s1289_s4 + $0x40] sm:$0xff] %v847_v12  ;;  %959 = vst [vmem:[%s1289_s4 + $0x48] sm:$0xff] %v848_v13  ;;  %vm869_vm15 = vcmp.gt.f32.partialorder %v865_v10, 0.0  ;;  %vm870_vm0 = vcmp.gt.f32.partialorder %v866_v11, 0.0 }
 0x2ad   :  { %960 = vst [vmem:[%s1289_s4 + $0x50] sm:$0xff] %v849_v14  ;;  %961 = vst [vmem:[%s1289_s4 + $0x58] sm:$0xff] %v850_v15  ;;  %v871_v16 = vmul.f32 0.2, %v863_v6  ;;  %v872_v17 = vmul.f32 0.2, %v864_v9 }
 0x2ae   :  { %v873_v18 = vmul.f32 0.2, %v865_v10  ;;  %v874_v19 = vmul.f32 0.2, %v866_v11 }
 0x2af   :  { %v875_v20 = vsel %vm867_vm13, %v863_v6, %v871_v16  ;;  %v876_v21 = vsel %vm868_vm14, %v864_v9, %v872_v17 }
 0x2b0   :  { %v877_v22 = vsel %vm869_vm15, %v865_v10, %v873_v18  ;;  %v878_v23 = vsel %vm870_vm0, %v866_v11, %v874_v19  ;;  %966 = vst [vmem:[%s1289_s4 + $0x60] sm:$0xff] %v875_v20  ;;  %967 = vst [vmem:[%s1289_s4 + $0x68] sm:$0xff] %v876_v21 }
 0x2b1   :  { %968 = vst [vmem:[%s1289_s4 + $0x70] sm:$0xff] %v877_v22  ;;  %969 = vst [vmem:[%s1289_s4 + $0x78] sm:$0xff] %v878_v23 }

</bundles_post_ra>
